<compile_context>
chip_gen: v6e
topology: v6e:2x2x1
jax: 0.10.0
libtpu: 0.0.40
codegen_flags: <defaults>
</compile_context>

<pallas_src>
import jax
import jax.numpy as jnp
from jax.experimental import pallas as pl
from jax.experimental.pallas import tpu as pltpu

IN_FEATURES = 15
HIDDEN = 3
OUT_FEATURES = 1

_W1_OFF = 0
_B1_OFF = IN_FEATURES * HIDDEN                 # 45
_W2_OFF = _B1_OFF + HIDDEN                     # 48
_B2_OFF = _W2_OFF + HIDDEN * OUT_FEATURES      # 51
N_PARAMS = _B2_OFF + OUT_FEATURES              # 52

_LANES = 128
_SUBLANES = 8


def _round_up(n, m):
    return ((n + m - 1) // m) * m


def regression_kernel(p_ref, x_ref, o_ref):
    """p_ref: SMEM f32[52] flat params; x_ref: VMEM (15, TS, 128); o_ref: VMEM (TS, 128)."""
    ts = x_ref.shape[1]
    vshape = (ts, _LANES)

    # Hidden-layer accumulators seeded with b1[j]; each is TS/8 full vregs.
    h = [jnp.full(vshape, p_ref[_B1_OFF + j], dtype=jnp.float32)
         for j in range(HIDDEN)]

    # Single pass over the 15 feature slices: h[j] += w1[k, j] * x[k]  (VPU FMAs).
    for k in range(IN_FEATURES):
        xk = x_ref[k]                                  # (TS, 128), fully dense vregs
        for j in range(HIDDEN):
            h[j] = h[j] + p_ref[_W1_OFF + k * HIDDEN + j] * xk

    # ReLU -> Dropout(0.1) (identity in eval mode) -> output layer (3 FMAs + bias).
    # TODO(synk): training-mode inverted dropout (pltpu.prng_seed / prng_random_bits
    #             mask scaled by 1/(1-p)) not implemented; eval semantics only.
    out = jnp.full(vshape, p_ref[_B2_OFF], dtype=jnp.float32)
    for j in range(HIDDEN):
        out = out + p_ref[_W2_OFF + j] * jnp.maximum(h[j], 0.0)

    o_ref[...] = out.astype(o_ref.dtype)


def regression_forward(x, w1, b1, w2, b2, *, max_rows_per_tile=256):
    """x: (B, 15); w1: (15, 3); b1: (3,); w2: (3, 1); b2: (1,).  Returns (B, 1) f32."""
    B = x.shape[0]

    # Batch slab geometry: rows of 128 batch elements; TS rows (multiple of 8) per tile.
    max_rows_per_tile = max(_SUBLANES, _round_up(max_rows_per_tile, _SUBLANES))
    rows = _round_up(max(B, 1), _LANES) // _LANES
    ts = min(max_rows_per_tile, _round_up(rows, _SUBLANES))
    rows_pad = _round_up(rows, ts)
    b_pad = rows_pad * _LANES
    grid = (rows_pad // ts,)

    # Flatten all parameters into one SMEM-resident scalar vector (row-major w1).
    params = jnp.concatenate(
        [w1.reshape(-1), b1.reshape(-1), w2.reshape(-1), b2.reshape(-1)]
    ).astype(jnp.float32)
    assert params.shape[0] == N_PARAMS

    # Layout plumbing only: feature-major, batch spread over (sublane, lane).
    #   x_t[k, r, l] = x[r*128 + l, k]   (zero-padded past B)
    x_t = jnp.pad(x.astype(jnp.float32).T, ((0, 0), (0, b_pad - B)))
    x_t = x_t.reshape(IN_FEATURES, rows_pad, _LANES)

    cost = pl.CostEstimate(
        flops=2 * b_pad * (IN_FEATURES * HIDDEN + HIDDEN * OUT_FEATURES),
        transcendentals=0,
        bytes_accessed=(x_t.size + rows_pad * _LANES + N_PARAMS) * 4,
    )

    out_slab = pl.pallas_call(
        regression_kernel,
        out_shape=jax.ShapeDtypeStruct((rows_pad, _LANES), jnp.float32),
        grid=grid,
        in_specs=[
            pl.BlockSpec(memory_space=pltpu.MemorySpace.SMEM),           # flat params
            pl.BlockSpec((IN_FEATURES, ts, _LANES), lambda i: (0, i, 0)),  # x slab
        ],
        out_specs=pl.BlockSpec((ts, _LANES), lambda i: (i, 0)),
        compiler_params=pltpu.CompilerParams(
            dimension_semantics=("parallel",)),
        cost_estimate=cost,
    )(params, x_t)

    return out_slab.reshape(b_pad)[:B].reshape(B, 1)


def init_params(key):
    # Deterministic init mimicking nn.Linear's uniform(-1/sqrt(fan_in), 1/sqrt(fan_in)).
    k1, k2, k3, k4 = jax.random.split(key, 4)
    bound1 = 1.0 / jnp.sqrt(15.0)
    bound2 = 1.0 / jnp.sqrt(3.0)
    w1 = jax.random.uniform(k1, (IN_FEATURES, HIDDEN), jnp.float32, -bound1, bound1)
    b1 = jax.random.uniform(k2, (HIDDEN,), jnp.float32, -bound1, bound1)
    w2 = jax.random.uniform(k3, (HIDDEN, OUT_FEATURES), jnp.float32, -bound2, bound2)
    b2 = jax.random.uniform(k4, (OUT_FEATURES,), jnp.float32, -bound2, bound2)
    return w1, b1, w2, b2


if __name__ == "__main__":
    key = jax.random.PRNGKey(0)
    k_x1, k_x2, k_x3, k_p = jax.random.split(key, 4)
    w1, b1, w2, b2 = init_params(k_p)

    def ref_fn(x):
        # Plain-JAX reference (eval-mode dropout = identity).
        return jnp.maximum(x @ w1 + b1, 0.0) @ w2 + b2

    # Small batch: single slab (TS=8 -> 1024 padded elements), grid = 1.
    B1 = 8
    x_small = jax.random.normal(k_x1, (B1, IN_FEATURES), jnp.float32)
    out_small = jax.block_until_ready(regression_forward(x_small, w1, b1, w2, b2))
    assert out_small.shape == (B1, 1)
    assert jnp.allclose(out_small, ref_fn(x_small), atol=1e-5, rtol=1e-5)

    # Medium batch with padding (1000 -> 1024), still a single grid step.
    B2 = 1000
    x_mid = jax.random.normal(k_x2, (B2, IN_FEATURES), jnp.float32)
    out_mid = jax.block_until_ready(regression_forward(x_mid, w1, b1, w2, b2))
    assert out_mid.shape == (B2, 1)
    assert jnp.allclose(out_mid, ref_fn(x_mid), atol=1e-5, rtol=1e-5)

    # Multi-tile parallel grid: small tile (TS=8) forces 3 grid steps + padding.
    B3 = 2500
    x_big = jax.random.normal(k_x3, (B3, IN_FEATURES), jnp.float32)
    out_big = jax.block_until_ready(
        regression_forward(x_big, w1, b1, w2, b2, max_rows_per_tile=8))
    assert out_big.shape == (B3, 1)
    assert jnp.allclose(out_big, ref_fn(x_big), atol=1e-5, rtol=1e-5)

    print("KERNEL_OK")
</pallas_src>

<mosaic_0001>
module attributes {stable_mosaic.version = 11 : i64} {
  func.func @regression_kernel(%arg0: i32, %arg1: memref<52xf32, #tpu.memory_space<smem>>, %arg2: memref<15x8x128xf32, #tpu.memory_space<vmem>>, %arg3: memref<8x128xf32, #tpu.memory_space<vmem>>) attributes {dimension_semantics = [#tpu.dimension_semantics<parallel>], iteration_bounds = array<i64: 1>, scalar_prefetch = 0 : i64, scratch_operands = 0 : i64, tpu.core_type = #tpu.core_type<tc>, window_params = [{transform_indices = @transform_0, window_bounds = array<i64: 52>}, {transform_indices = @transform_1, window_bounds = array<i64: 15, 8, 128>}, {transform_indices = @transform_2, window_bounds = array<i64: 8, 128>}]} {
    %c45 = arith.constant 45 : index
    %0 = memref.load %arg1[%c45] : memref<52xf32, #tpu.memory_space<smem>>
    %1 = vector.broadcast %0 : f32 to vector<8x128xf32>
    %c46 = arith.constant 46 : index
    %2 = memref.load %arg1[%c46] : memref<52xf32, #tpu.memory_space<smem>>
    %3 = vector.broadcast %2 : f32 to vector<8x128xf32>
    %c47 = arith.constant 47 : index
    %4 = memref.load %arg1[%c47] : memref<52xf32, #tpu.memory_space<smem>>
    %5 = vector.broadcast %4 : f32 to vector<8x128xf32>
    %c0 = arith.constant 0 : index
    %c0_0 = arith.constant 0 : index
    %c0_1 = arith.constant 0 : index
    %6 = vector.load %arg2[%c0, %c0_0, %c0_1] : memref<15x8x128xf32, #tpu.memory_space<vmem>>, vector<1x8x128xf32>
    %7 = vector.shape_cast %6 : vector<1x8x128xf32> to vector<8x128xf32>
    %c0_2 = arith.constant 0 : index
    %8 = memref.load %arg1[%c0_2] : memref<52xf32, #tpu.memory_space<smem>>
    %9 = vector.broadcast %8 : f32 to vector<8x128xf32>
    %10 = arith.mulf %9, %7 : vector<8x128xf32>
    %11 = arith.addf %1, %10 : vector<8x128xf32>
    %c1 = arith.constant 1 : index
    %12 = memref.load %arg1[%c1] : memref<52xf32, #tpu.memory_space<smem>>
    %13 = vector.broadcast %12 : f32 to vector<8x128xf32>
    %14 = arith.mulf %13, %7 : vector<8x128xf32>
    %15 = arith.addf %3, %14 : vector<8x128xf32>
    %c2 = arith.constant 2 : index
    %16 = memref.load %arg1[%c2] : memref<52xf32, #tpu.memory_space<smem>>
    %17 = vector.broadcast %16 : f32 to vector<8x128xf32>
    %18 = arith.mulf %17, %7 : vector<8x128xf32>
    %19 = arith.addf %5, %18 : vector<8x128xf32>
    %c1_3 = arith.constant 1 : index
    %c0_4 = arith.constant 0 : index
    %c0_5 = arith.constant 0 : index
    %20 = vector.load %arg2[%c1_3, %c0_4, %c0_5] : memref<15x8x128xf32, #tpu.memory_space<vmem>>, vector<1x8x128xf32>
    %21 = vector.shape_cast %20 : vector<1x8x128xf32> to vector<8x128xf32>
    %c3 = arith.constant 3 : index
    %22 = memref.load %arg1[%c3] : memref<52xf32, #tpu.memory_space<smem>>
    %23 = vector.broadcast %22 : f32 to vector<8x128xf32>
    %24 = arith.mulf %23, %21 : vector<8x128xf32>
    %25 = arith.addf %11, %24 : vector<8x128xf32>
    %c4 = arith.constant 4 : index
    %26 = memref.load %arg1[%c4] : memref<52xf32, #tpu.memory_space<smem>>
    %27 = vector.broadcast %26 : f32 to vector<8x128xf32>
    %28 = arith.mulf %27, %21 : vector<8x128xf32>
    %29 = arith.addf %15, %28 : vector<8x128xf32>
    %c5 = arith.constant 5 : index
    %30 = memref.load %arg1[%c5] : memref<52xf32, #tpu.memory_space<smem>>
    %31 = vector.broadcast %30 : f32 to vector<8x128xf32>
    %32 = arith.mulf %31, %21 : vector<8x128xf32>
    %33 = arith.addf %19, %32 : vector<8x128xf32>
    %c2_6 = arith.constant 2 : index
    %c0_7 = arith.constant 0 : index
    %c0_8 = arith.constant 0 : index
    %34 = vector.load %arg2[%c2_6, %c0_7, %c0_8] : memref<15x8x128xf32, #tpu.memory_space<vmem>>, vector<1x8x128xf32>
    %35 = vector.shape_cast %34 : vector<1x8x128xf32> to vector<8x128xf32>
    %c6 = arith.constant 6 : index
    %36 = memref.load %arg1[%c6] : memref<52xf32, #tpu.memory_space<smem>>
    %37 = vector.broadcast %36 : f32 to vector<8x128xf32>
    %38 = arith.mulf %37, %35 : vector<8x128xf32>
    %39 = arith.addf %25, %38 : vector<8x128xf32>
    %c7 = arith.constant 7 : index
    %40 = memref.load %arg1[%c7] : memref<52xf32, #tpu.memory_space<smem>>
    %41 = vector.broadcast %40 : f32 to vector<8x128xf32>
    %42 = arith.mulf %41, %35 : vector<8x128xf32>
    %43 = arith.addf %29, %42 : vector<8x128xf32>
    %c8 = arith.constant 8 : index
    %44 = memref.load %arg1[%c8] : memref<52xf32, #tpu.memory_space<smem>>
    %45 = vector.broadcast %44 : f32 to vector<8x128xf32>
    %46 = arith.mulf %45, %35 : vector<8x128xf32>
    %47 = arith.addf %33, %46 : vector<8x128xf32>
    %c3_9 = arith.constant 3 : index
    %c0_10 = arith.constant 0 : index
    %c0_11 = arith.constant 0 : index
    %48 = vector.load %arg2[%c3_9, %c0_10, %c0_11] : memref<15x8x128xf32, #tpu.memory_space<vmem>>, vector<1x8x128xf32>
    %49 = vector.shape_cast %48 : vector<1x8x128xf32> to vector<8x128xf32>
    %c9 = arith.constant 9 : index
    %50 = memref.load %arg1[%c9] : memref<52xf32, #tpu.memory_space<smem>>
    %51 = vector.broadcast %50 : f32 to vector<8x128xf32>
    %52 = arith.mulf %51, %49 : vector<8x128xf32>
    %53 = arith.addf %39, %52 : vector<8x128xf32>
    %c10 = arith.constant 10 : index
    %54 = memref.load %arg1[%c10] : memref<52xf32, #tpu.memory_space<smem>>
    %55 = vector.broadcast %54 : f32 to vector<8x128xf32>
    %56 = arith.mulf %55, %49 : vector<8x128xf32>
    %57 = arith.addf %43, %56 : vector<8x128xf32>
    %c11 = arith.constant 11 : index
    %58 = memref.load %arg1[%c11] : memref<52xf32, #tpu.memory_space<smem>>
    %59 = vector.broadcast %58 : f32 to vector<8x128xf32>
    %60 = arith.mulf %59, %49 : vector<8x128xf32>
    %61 = arith.addf %47, %60 : vector<8x128xf32>
    %c4_12 = arith.constant 4 : index
    %c0_13 = arith.constant 0 : index
    %c0_14 = arith.constant 0 : index
    %62 = vector.load %arg2[%c4_12, %c0_13, %c0_14] : memref<15x8x128xf32, #tpu.memory_space<vmem>>, vector<1x8x128xf32>
    %63 = vector.shape_cast %62 : vector<1x8x128xf32> to vector<8x128xf32>
    %c12 = arith.constant 12 : index
    %64 = memref.load %arg1[%c12] : memref<52xf32, #tpu.memory_space<smem>>
    %65 = vector.broadcast %64 : f32 to vector<8x128xf32>
    %66 = arith.mulf %65, %63 : vector<8x128xf32>
    %67 = arith.addf %53, %66 : vector<8x128xf32>
    %c13 = arith.constant 13 : index
    %68 = memref.load %arg1[%c13] : memref<52xf32, #tpu.memory_space<smem>>
    %69 = vector.broadcast %68 : f32 to vector<8x128xf32>
    %70 = arith.mulf %69, %63 : vector<8x128xf32>
    %71 = arith.addf %57, %70 : vector<8x128xf32>
    %c14 = arith.constant 14 : index
    %72 = memref.load %arg1[%c14] : memref<52xf32, #tpu.memory_space<smem>>
    %73 = vector.broadcast %72 : f32 to vector<8x128xf32>
    %74 = arith.mulf %73, %63 : vector<8x128xf32>
    %75 = arith.addf %61, %74 : vector<8x128xf32>
    %c5_15 = arith.constant 5 : index
    %c0_16 = arith.constant 0 : index
    %c0_17 = arith.constant 0 : index
    %76 = vector.load %arg2[%c5_15, %c0_16, %c0_17] : memref<15x8x128xf32, #tpu.memory_space<vmem>>, vector<1x8x128xf32>
    %77 = vector.shape_cast %76 : vector<1x8x128xf32> to vector<8x128xf32>
    %c15 = arith.constant 15 : index
    %78 = memref.load %arg1[%c15] : memref<52xf32, #tpu.memory_space<smem>>
    %79 = vector.broadcast %78 : f32 to vector<8x128xf32>
    %80 = arith.mulf %79, %77 : vector<8x128xf32>
    %81 = arith.addf %67, %80 : vector<8x128xf32>
    %c16 = arith.constant 16 : index
    %82 = memref.load %arg1[%c16] : memref<52xf32, #tpu.memory_space<smem>>
    %83 = vector.broadcast %82 : f32 to vector<8x128xf32>
    %84 = arith.mulf %83, %77 : vector<8x128xf32>
    %85 = arith.addf %71, %84 : vector<8x128xf32>
    %c17 = arith.constant 17 : index
    %86 = memref.load %arg1[%c17] : memref<52xf32, #tpu.memory_space<smem>>
    %87 = vector.broadcast %86 : f32 to vector<8x128xf32>
    %88 = arith.mulf %87, %77 : vector<8x128xf32>
    %89 = arith.addf %75, %88 : vector<8x128xf32>
    %c6_18 = arith.constant 6 : index
    %c0_19 = arith.constant 0 : index
    %c0_20 = arith.constant 0 : index
    %90 = vector.load %arg2[%c6_18, %c0_19, %c0_20] : memref<15x8x128xf32, #tpu.memory_space<vmem>>, vector<1x8x128xf32>
    %91 = vector.shape_cast %90 : vector<1x8x128xf32> to vector<8x128xf32>
    %c18 = arith.constant 18 : index
    %92 = memref.load %arg1[%c18] : memref<52xf32, #tpu.memory_space<smem>>
    %93 = vector.broadcast %92 : f32 to vector<8x128xf32>
    %94 = arith.mulf %93, %91 : vector<8x128xf32>
    %95 = arith.addf %81, %94 : vector<8x128xf32>
    %c19 = arith.constant 19 : index
    %96 = memref.load %arg1[%c19] : memref<52xf32, #tpu.memory_space<smem>>
    %97 = vector.broadcast %96 : f32 to vector<8x128xf32>
    %98 = arith.mulf %97, %91 : vector<8x128xf32>
    %99 = arith.addf %85, %98 : vector<8x128xf32>
    %c20 = arith.constant 20 : index
    %100 = memref.load %arg1[%c20] : memref<52xf32, #tpu.memory_space<smem>>
    %101 = vector.broadcast %100 : f32 to vector<8x128xf32>
    %102 = arith.mulf %101, %91 : vector<8x128xf32>
    %103 = arith.addf %89, %102 : vector<8x128xf32>
    %c7_21 = arith.constant 7 : index
    %c0_22 = arith.constant 0 : index
    %c0_23 = arith.constant 0 : index
    %104 = vector.load %arg2[%c7_21, %c0_22, %c0_23] : memref<15x8x128xf32, #tpu.memory_space<vmem>>, vector<1x8x128xf32>
    %105 = vector.shape_cast %104 : vector<1x8x128xf32> to vector<8x128xf32>
    %c21 = arith.constant 21 : index
    %106 = memref.load %arg1[%c21] : memref<52xf32, #tpu.memory_space<smem>>
    %107 = vector.broadcast %106 : f32 to vector<8x128xf32>
    %108 = arith.mulf %107, %105 : vector<8x128xf32>
    %109 = arith.addf %95, %108 : vector<8x128xf32>
    %c22 = arith.constant 22 : index
    %110 = memref.load %arg1[%c22] : memref<52xf32, #tpu.memory_space<smem>>
    %111 = vector.broadcast %110 : f32 to vector<8x128xf32>
    %112 = arith.mulf %111, %105 : vector<8x128xf32>
    %113 = arith.addf %99, %112 : vector<8x128xf32>
    %c23 = arith.constant 23 : index
    %114 = memref.load %arg1[%c23] : memref<52xf32, #tpu.memory_space<smem>>
    %115 = vector.broadcast %114 : f32 to vector<8x128xf32>
    %116 = arith.mulf %115, %105 : vector<8x128xf32>
    %117 = arith.addf %103, %116 : vector<8x128xf32>
    %c8_24 = arith.constant 8 : index
    %c0_25 = arith.constant 0 : index
    %c0_26 = arith.constant 0 : index
    %118 = vector.load %arg2[%c8_24, %c0_25, %c0_26] : memref<15x8x128xf32, #tpu.memory_space<vmem>>, vector<1x8x128xf32>
    %119 = vector.shape_cast %118 : vector<1x8x128xf32> to vector<8x128xf32>
    %c24 = arith.constant 24 : index
    %120 = memref.load %arg1[%c24] : memref<52xf32, #tpu.memory_space<smem>>
    %121 = vector.broadcast %120 : f32 to vector<8x128xf32>
    %122 = arith.mulf %121, %119 : vector<8x128xf32>
    %123 = arith.addf %109, %122 : vector<8x128xf32>
    %c25 = arith.constant 25 : index
    %124 = memref.load %arg1[%c25] : memref<52xf32, #tpu.memory_space<smem>>
    %125 = vector.broadcast %124 : f32 to vector<8x128xf32>
    %126 = arith.mulf %125, %119 : vector<8x128xf32>
    %127 = arith.addf %113, %126 : vector<8x128xf32>
    %c26 = arith.constant 26 : index
    %128 = memref.load %arg1[%c26] : memref<52xf32, #tpu.memory_space<smem>>
    %129 = vector.broadcast %128 : f32 to vector<8x128xf32>
    %130 = arith.mulf %129, %119 : vector<8x128xf32>
    %131 = arith.addf %117, %130 : vector<8x128xf32>
    %c9_27 = arith.constant 9 : index
    %c0_28 = arith.constant 0 : index
    %c0_29 = arith.constant 0 : index
    %132 = vector.load %arg2[%c9_27, %c0_28, %c0_29] : memref<15x8x128xf32, #tpu.memory_space<vmem>>, vector<1x8x128xf32>
    %133 = vector.shape_cast %132 : vector<1x8x128xf32> to vector<8x128xf32>
    %c27 = arith.constant 27 : index
    %134 = memref.load %arg1[%c27] : memref<52xf32, #tpu.memory_space<smem>>
    %135 = vector.broadcast %134 : f32 to vector<8x128xf32>
    %136 = arith.mulf %135, %133 : vector<8x128xf32>
    %137 = arith.addf %123, %136 : vector<8x128xf32>
    %c28 = arith.constant 28 : index
    %138 = memref.load %arg1[%c28] : memref<52xf32, #tpu.memory_space<smem>>
    %139 = vector.broadcast %138 : f32 to vector<8x128xf32>
    %140 = arith.mulf %139, %133 : vector<8x128xf32>
    %141 = arith.addf %127, %140 : vector<8x128xf32>
    %c29 = arith.constant 29 : index
    %142 = memref.load %arg1[%c29] : memref<52xf32, #tpu.memory_space<smem>>
    %143 = vector.broadcast %142 : f32 to vector<8x128xf32>
    %144 = arith.mulf %143, %133 : vector<8x128xf32>
    %145 = arith.addf %131, %144 : vector<8x128xf32>
    %c10_30 = arith.constant 10 : index
    %c0_31 = arith.constant 0 : index
    %c0_32 = arith.constant 0 : index
    %146 = vector.load %arg2[%c10_30, %c0_31, %c0_32] : memref<15x8x128xf32, #tpu.memory_space<vmem>>, vector<1x8x128xf32>
    %147 = vector.shape_cast %146 : vector<1x8x128xf32> to vector<8x128xf32>
    %c30 = arith.constant 30 : index
    %148 = memref.load %arg1[%c30] : memref<52xf32, #tpu.memory_space<smem>>
    %149 = vector.broadcast %148 : f32 to vector<8x128xf32>
    %150 = arith.mulf %149, %147 : vector<8x128xf32>
    %151 = arith.addf %137, %150 : vector<8x128xf32>
    %c31 = arith.constant 31 : index
    %152 = memref.load %arg1[%c31] : memref<52xf32, #tpu.memory_space<smem>>
    %153 = vector.broadcast %152 : f32 to vector<8x128xf32>
    %154 = arith.mulf %153, %147 : vector<8x128xf32>
    %155 = arith.addf %141, %154 : vector<8x128xf32>
    %c32 = arith.constant 32 : index
    %156 = memref.load %arg1[%c32] : memref<52xf32, #tpu.memory_space<smem>>
    %157 = vector.broadcast %156 : f32 to vector<8x128xf32>
    %158 = arith.mulf %157, %147 : vector<8x128xf32>
    %159 = arith.addf %145, %158 : vector<8x128xf32>
    %c11_33 = arith.constant 11 : index
    %c0_34 = arith.constant 0 : index
    %c0_35 = arith.constant 0 : index
    %160 = vector.load %arg2[%c11_33, %c0_34, %c0_35] : memref<15x8x128xf32, #tpu.memory_space<vmem>>, vector<1x8x128xf32>
    %161 = vector.shape_cast %160 : vector<1x8x128xf32> to vector<8x128xf32>
    %c33 = arith.constant 33 : index
    %162 = memref.load %arg1[%c33] : memref<52xf32, #tpu.memory_space<smem>>
    %163 = vector.broadcast %162 : f32 to vector<8x128xf32>
    %164 = arith.mulf %163, %161 : vector<8x128xf32>
    %165 = arith.addf %151, %164 : vector<8x128xf32>
    %c34 = arith.constant 34 : index
    %166 = memref.load %arg1[%c34] : memref<52xf32, #tpu.memory_space<smem>>
    %167 = vector.broadcast %166 : f32 to vector<8x128xf32>
    %168 = arith.mulf %167, %161 : vector<8x128xf32>
    %169 = arith.addf %155, %168 : vector<8x128xf32>
    %c35 = arith.constant 35 : index
    %170 = memref.load %arg1[%c35] : memref<52xf32, #tpu.memory_space<smem>>
    %171 = vector.broadcast %170 : f32 to vector<8x128xf32>
    %172 = arith.mulf %171, %161 : vector<8x128xf32>
    %173 = arith.addf %159, %172 : vector<8x128xf32>
    %c12_36 = arith.constant 12 : index
    %c0_37 = arith.constant 0 : index
    %c0_38 = arith.constant 0 : index
    %174 = vector.load %arg2[%c12_36, %c0_37, %c0_38] : memref<15x8x128xf32, #tpu.memory_space<vmem>>, vector<1x8x128xf32>
    %175 = vector.shape_cast %174 : vector<1x8x128xf32> to vector<8x128xf32>
    %c36 = arith.constant 36 : index
    %176 = memref.load %arg1[%c36] : memref<52xf32, #tpu.memory_space<smem>>
    %177 = vector.broadcast %176 : f32 to vector<8x128xf32>
    %178 = arith.mulf %177, %175 : vector<8x128xf32>
    %179 = arith.addf %165, %178 : vector<8x128xf32>
    %c37 = arith.constant 37 : index
    %180 = memref.load %arg1[%c37] : memref<52xf32, #tpu.memory_space<smem>>
    %181 = vector.broadcast %180 : f32 to vector<8x128xf32>
    %182 = arith.mulf %181, %175 : vector<8x128xf32>
    %183 = arith.addf %169, %182 : vector<8x128xf32>
    %c38 = arith.constant 38 : index
    %184 = memref.load %arg1[%c38] : memref<52xf32, #tpu.memory_space<smem>>
    %185 = vector.broadcast %184 : f32 to vector<8x128xf32>
    %186 = arith.mulf %185, %175 : vector<8x128xf32>
    %187 = arith.addf %173, %186 : vector<8x128xf32>
    %c13_39 = arith.constant 13 : index
    %c0_40 = arith.constant 0 : index
    %c0_41 = arith.constant 0 : index
    %188 = vector.load %arg2[%c13_39, %c0_40, %c0_41] : memref<15x8x128xf32, #tpu.memory_space<vmem>>, vector<1x8x128xf32>
    %189 = vector.shape_cast %188 : vector<1x8x128xf32> to vector<8x128xf32>
    %c39 = arith.constant 39 : index
    %190 = memref.load %arg1[%c39] : memref<52xf32, #tpu.memory_space<smem>>
    %191 = vector.broadcast %190 : f32 to vector<8x128xf32>
    %192 = arith.mulf %191, %189 : vector<8x128xf32>
    %193 = arith.addf %179, %192 : vector<8x128xf32>
    %c40 = arith.constant 40 : index
    %194 = memref.load %arg1[%c40] : memref<52xf32, #tpu.memory_space<smem>>
    %195 = vector.broadcast %194 : f32 to vector<8x128xf32>
    %196 = arith.mulf %195, %189 : vector<8x128xf32>
    %197 = arith.addf %183, %196 : vector<8x128xf32>
    %c41 = arith.constant 41 : index
    %198 = memref.load %arg1[%c41] : memref<52xf32, #tpu.memory_space<smem>>
    %199 = vector.broadcast %198 : f32 to vector<8x128xf32>
    %200 = arith.mulf %199, %189 : vector<8x128xf32>
    %201 = arith.addf %187, %200 : vector<8x128xf32>
    %c14_42 = arith.constant 14 : index
    %c0_43 = arith.constant 0 : index
    %c0_44 = arith.constant 0 : index
    %202 = vector.load %arg2[%c14_42, %c0_43, %c0_44] : memref<15x8x128xf32, #tpu.memory_space<vmem>>, vector<1x8x128xf32>
    %203 = vector.shape_cast %202 : vector<1x8x128xf32> to vector<8x128xf32>
    %c42 = arith.constant 42 : index
    %204 = memref.load %arg1[%c42] : memref<52xf32, #tpu.memory_space<smem>>
    %205 = vector.broadcast %204 : f32 to vector<8x128xf32>
    %206 = arith.mulf %205, %203 : vector<8x128xf32>
    %207 = arith.addf %193, %206 : vector<8x128xf32>
    %c43 = arith.constant 43 : index
    %208 = memref.load %arg1[%c43] : memref<52xf32, #tpu.memory_space<smem>>
    %209 = vector.broadcast %208 : f32 to vector<8x128xf32>
    %210 = arith.mulf %209, %203 : vector<8x128xf32>
    %211 = arith.addf %197, %210 : vector<8x128xf32>
    %c44 = arith.constant 44 : index
    %212 = memref.load %arg1[%c44] : memref<52xf32, #tpu.memory_space<smem>>
    %213 = vector.broadcast %212 : f32 to vector<8x128xf32>
    %214 = arith.mulf %213, %203 : vector<8x128xf32>
    %215 = arith.addf %201, %214 : vector<8x128xf32>
    %c51 = arith.constant 51 : index
    %216 = memref.load %arg1[%c51] : memref<52xf32, #tpu.memory_space<smem>>
    %217 = vector.broadcast %216 : f32 to vector<8x128xf32>
    %c48 = arith.constant 48 : index
    %218 = memref.load %arg1[%c48] : memref<52xf32, #tpu.memory_space<smem>>
    %cst = arith.constant 0.000000e+00 : f32
    %219 = vector.broadcast %cst : f32 to vector<8x128xf32>
    %220 = arith.maximumf %207, %219 : vector<8x128xf32>
    %221 = vector.broadcast %218 : f32 to vector<8x128xf32>
    %222 = arith.mulf %221, %220 : vector<8x128xf32>
    %223 = arith.addf %217, %222 : vector<8x128xf32>
    %c49 = arith.constant 49 : index
    %224 = memref.load %arg1[%c49] : memref<52xf32, #tpu.memory_space<smem>>
    %cst_45 = arith.constant 0.000000e+00 : f32
    %225 = vector.broadcast %cst_45 : f32 to vector<8x128xf32>
    %226 = arith.maximumf %211, %225 : vector<8x128xf32>
    %227 = vector.broadcast %224 : f32 to vector<8x128xf32>
    %228 = arith.mulf %227, %226 : vector<8x128xf32>
    %229 = arith.addf %223, %228 : vector<8x128xf32>
    %c50 = arith.constant 50 : index
    %230 = memref.load %arg1[%c50] : memref<52xf32, #tpu.memory_space<smem>>
    %cst_46 = arith.constant 0.000000e+00 : f32
    %231 = vector.broadcast %cst_46 : f32 to vector<8x128xf32>
    %232 = arith.maximumf %215, %231 : vector<8x128xf32>
    %233 = vector.broadcast %230 : f32 to vector<8x128xf32>
    %234 = arith.mulf %233, %232 : vector<8x128xf32>
    %235 = arith.addf %229, %234 : vector<8x128xf32>
    %c0_47 = arith.constant 0 : index
    %c0_48 = arith.constant 0 : index
    %236 = vector.load %arg3[%c0_47, %c0_48] : memref<8x128xf32, #tpu.memory_space<vmem>>, vector<8x128xf32>
    tpu.vector_store %arg3[%c0_47, %c0_48], %235 {strides = array<i32>} : memref<8x128xf32, #tpu.memory_space<vmem>>, vector<8x128xf32>,
    return
  }
  func.func @transform_0(%arg0: i32) -> i32 {
    %c0_i32 = arith.constant 0 : i32
    %c0_i32_0 = arith.constant 0 : i32
    return %c0_i32 : i32
  }
  func.func @transform_1(%arg0: i32) -> (i32, i32, i32) {
    %c0_i32 = arith.constant 0 : i32
    %c0_i32_0 = arith.constant 0 : i32
    %c0_i32_1 = arith.constant 0 : i32
    return %c0_i32, %arg0, %c0_i32_0 : i32, i32, i32
  }
  func.func @transform_2(%arg0: i32) -> (i32, i32) {
    %c0_i32 = arith.constant 0 : i32
    %c0_i32_0 = arith.constant 0 : i32
    return %arg0, %c0_i32 : i32, i32
  }
}

</mosaic_0001>

<bundles_post_ra>
// kernel: tpu_custom_call.1
= control target key start
LH: loop header
LB: loop body
LE: loop exit
PB: predicated region body
PF: predicated region fallthrough
CT: control target
= control target key end

     0   :  { %7 = vsyncpa [#allocation5], 0  ;;  %s428_s0 = inlined_call_operand.hbm [shape: f32[52], index: 0, kind: input, shape index: {}]   ;;  %s429_s1 = inlined_call_operand.hbm [shape: f32[15,8,128], index: 1, kind: input, shape index: {}]   ;;  %s430_s2 = inlined_call_operand.hbm [shape: f32[8,128], index: 2, kind: output, shape index: {}]  }
   0x1   :  { %8 = vsyncpa [#allocation3], 0 }
   0x2   :  { %9 = vsyncpa [#allocation4], 0  ;;  %s396_s9 = smov [#allocation2]   ;;  %s397_s12 = smov [#allocation6]  }
   0x3   :  { %17 = dma.hbm_to_smem %s428_s0, 16, %s396_s9, [#allocation5]  }
   0x4   :  { %s23_s13 = sshll.u32 %s397_s12, 4  ;;  %s24_s13 = int_to_ptr.vmem [resolvable:$true] %s23_s13 }
   0x5   :  { %s358_s14 = scalar_lea.vmem %s24_s13, 1920  ;;  %p363_p1 = scmp.lt.s32.totalorder %s24_s13, %s24_s13 }
   0x6   :  { %p359_p0 = scmp.ne.s32.totalorder %s24_s13, %s358_s14  ;;  %p364_p2 = scmp.lt.s32.totalorder %s358_s14, %s358_s14 }
   0x8   :  { %p365_p3 = por %p364_p2, %p363_p1 }
   0xa   :  { %p366_p4 = pnand %p365_p3, %p359_p0 }
   0xc   :  { %369 = shalt.err (!%p366_p4)
}
   0xd   :  { %s398_s15 = smov 128   ;;  %s399_s16 = smov 8  }
   0xe   :  { %29 = dma.hbm_to_vmem [thread:$0]  %s429_s1, 1920, %s24_s13, [#allocation3], %s398_s15, %s398_s15, %s399_s16  }
   0xf   :  { %390 = dma.done.wait [#allocation5], 16  }
  0x10   :  { %391 = vsyncadd [#allocation5], 4294967280 }
  0x11   :  { %392 = dma.done.wait [#allocation3], 1920  }
  0x12   :  { %393 = vsyncadd [#allocation3], 4294965376 }
  0x13   :  { %36 = sfence }
  0x14   :  { %s286_s0 = sld [smem:[#allocation2 + $0x2d]]  ;;  %v43_v0 = vld [vmem:[#allocation6] sm:$0xff]  ;;  %v57_v6 = vld [vmem:[#allocation6 + $0x8] sm:$0xff]  ;;  %v71_v16 = vld [vmem:[#allocation6 + $0x10] sm:$0xff] }
  0x15   :  { %s287_s19 = sld [smem:[#allocation2 + $0x2e]]  ;;  %v85_v26 = vld [vmem:[#allocation6 + $0x18] sm:$0xff]  ;;  %v99_v36 = vld [vmem:[#allocation6 + $0x20] sm:$0xff]  ;;  %v113_v46 = vld [vmem:[#allocation6 + $0x28] sm:$0xff] }
  0x16   :  { %s288_s20 = sld [smem:[#allocation2 + $0x2f]]  ;;  %v127_v56 = vld [vmem:[#allocation6 + $0x30] sm:$0xff] }
  0x17   :  { %s44_s21 = sld [smem:[#allocation2]] }
  0x18   :  { %s289_s22 = sld [smem:[#allocation2 + $0x1]] }
  0x19   :  { %s290_s23 = sld [smem:[#allocation2 + $0x2]] }
  0x1a   :  { %s291_s24 = sld [smem:[#allocation2 + $0x3]]  ;;  %v38_v1 = vstv %s286_s0 }
  0x1b   :  { %s292_s25 = sld [smem:[#allocation2 + $0x4]]  ;;  %v40_v3 = vstv %s287_s19 }
  0x1c   :  { %s293_s26 = sld [smem:[#allocation2 + $0x5]]  ;;  %v42_v7 = vstv %s288_s20 }
  0x1d   :  { %v45_v2 = vstv %s44_s21  ;;  %s294_s27 = sld [smem:[#allocation2 + $0x6]] }
  0x1e   :  { %v46_v4 = vmul.f32 %v45_v2, %v43_v0  ;;  %v49_v5 = vstv %s289_s22  ;;  %s295_s1 = sld [smem:[#allocation2 + $0x7]]  ;;  %v141_v2 = vld [vmem:[#allocation6 + $0x38] sm:$0xff] }
  0x1f   :  { %v50_v8 = vmul.f32 %v49_v5, %v43_v0  ;;  %v53_v9 = vstv %s290_s23  ;;  %s296_s28 = sld [smem:[#allocation2 + $0x8]] }
  0x20   :  { %v47_v10 = vadd.f32 %v46_v4, %v38_v1  ;;  %v54_v11 = vmul.f32 %v53_v9, %v43_v0  ;;  %v59_v12 = vstv %s291_s24  ;;  %s297_s29 = sld [smem:[#allocation2 + $0x9]] }
  0x21   :  { %v51_v13 = vadd.f32 %v50_v8, %v40_v3  ;;  %v60_v14 = vmul.f32 %v59_v12, %v57_v6  ;;  %v63_v15 = vstv %s292_s25  ;;  %s298_s30 = sld [smem:[#allocation2 + $0xa]]  ;;  %v155_v12 = vld [vmem:[#allocation6 + $0x40] sm:$0xff] }
  0x22   :  { %v55_v17 = vadd.f32 %v54_v11, %v42_v7  ;;  %v64_v18 = vmul.f32 %v63_v15, %v57_v6  ;;  %v67_v19 = vstv %s293_s26  ;;  %s299_s3 = sld [smem:[#allocation2 + $0xb]] }
  0x23   :  { %v61_v20 = vadd.f32 %v60_v14, %v47_v10  ;;  %v68_v21 = vmul.f32 %v67_v19, %v57_v6  ;;  %v73_v22 = vstv %s294_s27  ;;  %s300_s4 = sld [smem:[#allocation2 + $0xc]] }
  0x24   :  { %v65_v23 = vadd.f32 %v64_v18, %v51_v13  ;;  %v74_v24 = vmul.f32 %v73_v22, %v71_v16  ;;  %v77_v25 = vstv %s295_s1  ;;  %s301_s5 = sld [smem:[#allocation2 + $0xd]]  ;;  %v169_v22 = vld [vmem:[#allocation6 + $0x48] sm:$0xff] }
  0x25   :  { %v69_v27 = vadd.f32 %v68_v21, %v55_v17  ;;  %v78_v28 = vmul.f32 %v77_v25, %v71_v16  ;;  %v81_v29 = vstv %s296_s28  ;;  %s302_s6 = sld [smem:[#allocation2 + $0xe]] }
  0x26   :  { %v75_v30 = vadd.f32 %v74_v24, %v61_v20  ;;  %v82_v31 = vmul.f32 %v81_v29, %v71_v16  ;;  %v87_v32 = vstv %s297_s29  ;;  %s303_s7 = sld [smem:[#allocation2 + $0xf]] }
  0x27   :  { %v79_v33 = vadd.f32 %v78_v28, %v65_v23  ;;  %v88_v34 = vmul.f32 %v87_v32, %v85_v26  ;;  %v91_v35 = vstv %s298_s30  ;;  %s304_s8 = sld [smem:[#allocation2 + $0x10]]  ;;  %v183_v32 = vld [vmem:[#allocation6 + $0x50] sm:$0xff] }
  0x28   :  { %v83_v37 = vadd.f32 %v82_v31, %v69_v27  ;;  %v92_v38 = vmul.f32 %v91_v35, %v85_v26  ;;  %v95_v39 = vstv %s299_s3  ;;  %s305_s9 = sld [smem:[#allocation2 + $0x11]] }
  0x29   :  { %v89_v40 = vadd.f32 %v88_v34, %v75_v30  ;;  %v96_v41 = vmul.f32 %v95_v39, %v85_v26  ;;  %v101_v42 = vstv %s300_s4  ;;  %s306_s10 = sld [smem:[#allocation2 + $0x12]] }
  0x2a   :  { %v93_v43 = vadd.f32 %v92_v38, %v79_v33  ;;  %v102_v44 = vmul.f32 %v101_v42, %v99_v36  ;;  %v105_v45 = vstv %s301_s5  ;;  %s307_s11 = sld [smem:[#allocation2 + $0x13]]  ;;  %v197_v42 = vld [vmem:[#allocation6 + $0x58] sm:$0xff] }
  0x2b   :  { %v97_v47 = vadd.f32 %v96_v41, %v83_v37  ;;  %v106_v48 = vmul.f32 %v105_v45, %v99_v36  ;;  %v109_v49 = vstv %s302_s6  ;;  %s308_s12 = sld [smem:[#allocation2 + $0x14]] }
  0x2c   :  { %v103_v50 = vadd.f32 %v102_v44, %v89_v40  ;;  %v110_v51 = vmul.f32 %v109_v49, %v99_v36  ;;  %v115_v52 = vstv %s303_s7  ;;  %s309_s13 = sld [smem:[#allocation2 + $0x15]] }
  0x2d   :  { %v107_v53 = vadd.f32 %v106_v48, %v93_v43  ;;  %v116_v54 = vmul.f32 %v115_v52, %v113_v46  ;;  %v119_v55 = vstv %s304_s8  ;;  %s310_s14 = sld [smem:[#allocation2 + $0x16]]  ;;  %v211_v52 = vld [vmem:[#allocation6 + $0x60] sm:$0xff] }
  0x2e   :  { %v111_v57 = vadd.f32 %v110_v51, %v97_v47  ;;  %v120_v58 = vmul.f32 %v119_v55, %v113_v46  ;;  %v123_v59 = vstv %s305_s9  ;;  %s311_s15 = sld [smem:[#allocation2 + $0x17]] }
  0x2f   :  { %v117_v60 = vadd.f32 %v116_v54, %v103_v50  ;;  %v124_v61 = vmul.f32 %v123_v59, %v113_v46  ;;  %v129_v62 = vstv %s306_s10  ;;  %s312_s16 = sld [smem:[#allocation2 + $0x18]] }
  0x30   :  { %v121_v63 = vadd.f32 %v120_v58, %v107_v53  ;;  %v130_v0 = vmul.f32 %v129_v62, %v127_v56  ;;  %v133_v1 = vstv %s307_s11  ;;  %s313_s17 = sld [smem:[#allocation2 + $0x19]]  ;;  %v225_v62 = vld [vmem:[#allocation6 + $0x68] sm:$0xff]  ;;  %s400_s11 = smov [#allocation7]  }
  0x31   :  { %v125_v3 = vadd.f32 %v124_v61, %v111_v57  ;;  %v134_v4 = vmul.f32 %v133_v1, %v127_v56  ;;  %v137_v5 = vstv %s308_s12  ;;  %s314_s18 = sld [smem:[#allocation2 + $0x1a]]  ;;  %s276_s12 = sshll.u32 %s400_s11, 4  ;;  %s277_s12 = int_to_ptr.vmem [resolvable:$true] %s276_s12 }
  0x32   :  { %v131_v6 = vadd.f32 %v130_v0, %v117_v60  ;;  %v138_v7 = vmul.f32 %v137_v5, %v127_v56  ;;  %v143_v8 = vstv %s309_s13  ;;  %s315_s0 = sld [smem:[#allocation2 + $0x1b]]  ;;  %s370_s13 = scalar_lea.vmem %s277_s12, 128 }
  0x33   :  { %v135_v9 = vadd.f32 %v134_v4, %v121_v63  ;;  %v144_v10 = vmul.f32 %v143_v8, %v141_v2  ;;  %v147_v11 = vstv %s310_s14  ;;  %s316_s19 = sld [smem:[#allocation2 + $0x1c]]  ;;  %v239_v8 = vld [vmem:[#allocation6 + $0x70] sm:$0xff]  ;;  %p371_p5 = scmp.ne.s32.totalorder %s277_s12, %s370_s13 }
  0x34   :  { %v139_v13 = vadd.f32 %v138_v7, %v125_v3  ;;  %v148_v14 = vmul.f32 %v147_v11, %v141_v2  ;;  %v151_v15 = vstv %s311_s15  ;;  %s317_s20 = sld [smem:[#allocation2 + $0x1d]]  ;;  %p375_p6 = scmp.lt.s32.totalorder %s277_s12, %s277_s12 }
  0x35   :  { %v145_v16 = vadd.f32 %v144_v10, %v131_v6  ;;  %v152_v17 = vmul.f32 %v151_v15, %v141_v2  ;;  %v157_v18 = vstv %s312_s16  ;;  %s318_s21 = sld [smem:[#allocation2 + $0x1e]]  ;;  %p376_p7 = scmp.lt.s32.totalorder %s370_s13, %s370_s13 }
  0x36   :  { %v149_v19 = vadd.f32 %v148_v14, %v135_v9  ;;  %v158_v20 = vmul.f32 %v157_v18, %v155_v12  ;;  %v161_v21 = vstv %s313_s17  ;;  %s319_s22 = sld [smem:[#allocation2 + $0x1f]] }
  0x37   :  { %v153_v23 = vadd.f32 %v152_v17, %v139_v13  ;;  %v162_v24 = vmul.f32 %v161_v21, %v155_v12  ;;  %v165_v25 = vstv %s314_s18  ;;  %s320_s23 = sld [smem:[#allocation2 + $0x20]]  ;;  %p377_p8 = por %p376_p7, %p375_p6 }
  0x38   :  { %v159_v26 = vadd.f32 %v158_v20, %v145_v16  ;;  %v166_v27 = vmul.f32 %v165_v25, %v155_v12  ;;  %v171_v28 = vstv %s315_s0  ;;  %s321_s24 = sld [smem:[#allocation2 + $0x21]] }
  0x39   :  { %v163_v29 = vadd.f32 %v162_v24, %v149_v19  ;;  %v172_v30 = vmul.f32 %v171_v28, %v169_v22  ;;  %v175_v31 = vstv %s316_s19  ;;  %s322_s25 = sld [smem:[#allocation2 + $0x22]]  ;;  %p378_p9 = pnand %p377_p8, %p371_p5 }
  0x3a   :  { %v167_v33 = vadd.f32 %v166_v27, %v153_v23  ;;  %v176_v34 = vmul.f32 %v175_v31, %v169_v22  ;;  %v179_v35 = vstv %s317_s20  ;;  %s323_s26 = sld [smem:[#allocation2 + $0x23]] }
  0x3b   :  { %v173_v36 = vadd.f32 %v172_v30, %v159_v26  ;;  %v180_v37 = vmul.f32 %v179_v35, %v169_v22  ;;  %v185_v38 = vstv %s318_s21  ;;  %s324_s27 = sld [smem:[#allocation2 + $0x24]] }
  0x3c   :  { %v177_v39 = vadd.f32 %v176_v34, %v163_v29  ;;  %v186_v40 = vmul.f32 %v185_v38, %v183_v32  ;;  %v189_v41 = vstv %s319_s22  ;;  %s325_s1 = sld [smem:[#allocation2 + $0x25]] }
  0x3d   :  { %v181_v43 = vadd.f32 %v180_v37, %v167_v33  ;;  %v190_v44 = vmul.f32 %v189_v41, %v183_v32  ;;  %v193_v45 = vstv %s320_s23  ;;  %s326_s28 = sld [smem:[#allocation2 + $0x26]] }
  0x3e   :  { %v187_v46 = vadd.f32 %v186_v40, %v173_v36  ;;  %v194_v47 = vmul.f32 %v193_v45, %v183_v32  ;;  %v199_v48 = vstv %s321_s24  ;;  %s327_s29 = sld [smem:[#allocation2 + $0x27]] }
  0x3f   :  { %v191_v49 = vadd.f32 %v190_v44, %v177_v39  ;;  %v200_v50 = vmul.f32 %v199_v48, %v197_v42  ;;  %v203_v51 = vstv %s322_s25  ;;  %s328_s30 = sld [smem:[#allocation2 + $0x28]] }
  0x40   :  { %v195_v53 = vadd.f32 %v194_v47, %v181_v43  ;;  %v204_v54 = vmul.f32 %v203_v51, %v197_v42  ;;  %v207_v55 = vstv %s323_s26  ;;  %s329_s3 = sld [smem:[#allocation2 + $0x29]] }
  0x41   :  { %v201_v56 = vadd.f32 %v200_v50, %v187_v46  ;;  %v208_v57 = vmul.f32 %v207_v55, %v197_v42  ;;  %v213_v58 = vstv %s324_s27  ;;  %s330_s4 = sld [smem:[#allocation2 + $0x2a]] }
  0x42   :  { %v205_v59 = vadd.f32 %v204_v54, %v191_v49  ;;  %v214_v60 = vmul.f32 %v213_v58, %v211_v52  ;;  %v217_v61 = vstv %s325_s1  ;;  %s331_s5 = sld [smem:[#allocation2 + $0x2b]] }
  0x43   :  { %v209_v63 = vadd.f32 %v208_v57, %v195_v53  ;;  %v218_v0 = vmul.f32 %v217_v61, %v211_v52  ;;  %v221_v1 = vstv %s326_s28  ;;  %s332_s6 = sld [smem:[#allocation2 + $0x2c]] }
  0x44   :  { %v215_v2 = vadd.f32 %v214_v60, %v201_v56  ;;  %v222_v3 = vmul.f32 %v221_v1, %v211_v52  ;;  %v227_v4 = vstv %s327_s29  ;;  %s422_s7 = sld [smem:[#allocation2 + $0x33]] }
  0x45   :  { %v219_v5 = vadd.f32 %v218_v0, %v205_v59  ;;  %v228_v6 = vmul.f32 %v227_v4, %v225_v62  ;;  %v231_v7 = vstv %s328_s30  ;;  %s334_s8 = sld [smem:[#allocation2 + $0x30]] }
  0x46   :  { %v223_v9 = vadd.f32 %v222_v3, %v209_v63  ;;  %v232_v10 = vmul.f32 %v231_v7, %v225_v62  ;;  %v235_v11 = vstv %s329_s3  ;;  %s335_s9 = sld [smem:[#allocation2 + $0x31]] }
  0x47   :  { %v229_v12 = vadd.f32 %v228_v6, %v215_v2  ;;  %v236_v13 = vmul.f32 %v235_v11, %v225_v62  ;;  %v241_v14 = vstv %s330_s4  ;;  %s336_s10 = sld [smem:[#allocation2 + $0x32]] }
  0x48   :  { %v233_v15 = vadd.f32 %v232_v10, %v219_v5  ;;  %v242_v16 = vmul.f32 %v241_v14, %v239_v8  ;;  %v245_v17 = vstv %s331_s5 }
  0x49   :  { %v237_v18 = vadd.f32 %v236_v13, %v223_v9  ;;  %v246_v19 = vmul.f32 %v245_v17, %v239_v8  ;;  %v249_v20 = vstv %s332_s6 }
  0x4a   :  { %v243_v21 = vadd.f32 %v242_v16, %v229_v12  ;;  %v250_v22 = vmul.f32 %v249_v20, %v239_v8  ;;  %v253_v28 = vstv %s422_s7 }
  0x4b   :  { %v247_v23 = vadd.f32 %v246_v19, %v233_v15  ;;  %v256_v24 = vstv %s334_s8 }
  0x4c   :  { %v251_v25 = vadd.f32 %v250_v22, %v237_v18  ;;  %v255_v26 = vmax.f32 %v243_v21, 0.0  ;;  %v261_v27 = vstv %s335_s9 }
  0x4d   :  { %v260_v29 = vmax.f32 %v247_v23, 0.0  ;;  %v266_v30 = vstv %s336_s10 }
  0x4e   :  { %v257_v31 = vmul.f32 %v256_v24, %v255_v26  ;;  %v265_v32 = vmax.f32 %v251_v25, 0.0 }
  0x4f   :  { %v262_v33 = vmul.f32 %v261_v27, %v260_v29 }
  0x50   :  { %v258_v34 = vadd.f32 %v257_v31, %v253_v28  ;;  %v267_v35 = vmul.f32 %v266_v30, %v265_v32 }
  0x52   :  { %v263_v36 = vadd.f32 %v262_v33, %v258_v34 }
  0x54   :  { %v268_v37 = vadd.f32 %v267_v35, %v263_v36 }
  0x56   :  { %269 = vst [vmem:[#allocation7] sm:$0xff] %v268_v37 }
  0x57   :  { %381 = shalt.err (!%p378_p9)
}
  0x58   :  { %279 = dma.vmem_to_hbm [thread:$0]  %s277_s12, 128, %s430_s2, [#allocation4]  }
  0x59   :  { %394 = dma.done.wait [#allocation4], 128  }
  0x5a   :  { %395 = vsyncadd [#allocation4], 4294967168 }
  0x5b   :  { %283 = vsyncpa [#allocation3], 1 }
  0x5c   :  { %284 = vsyncpa [#allocation4], 1 }
  0x5d   :  { %285 = vsyncpa [#allocation5], 1 }

</bundles_post_ra>
